<compile_context>
chip_gen: v7x
topology: tpu7x:2x2x1
jax: 0.10.0
libtpu: 0.0.40
codegen_flags: <defaults>
</compile_context>

<pallas_src>
import jax
import jax.numpy as jnp
from jax.experimental import pallas as pl
from jax.experimental.pallas import tpu as pltpu

BN_EPS = 1e-5
NEG_INF = -1e30
LANE = 128


def _round_up(n, m):
    return ((n + m - 1) // m) * m


def policy_kernel(x_ref, w_ref, bn_ref, wf_ref, bf_ref, o_ref):
    # x_ref : (1, B, Hp)      one sub-batch of activations, f32
    # w_ref : (L, 2, Hp, Hp)  fc1 / fc2 weights, laid out (in, out), bf16
    # bn_ref: (4*L, Hp)       rows [gamma1, beta1, gamma2, beta2] per layer, f32
    # wf_ref: (Hp, Ap)        final linear weight (in, out), bf16
    # bf_ref: (1, Ap)         final bias, f32 (padded lanes = NEG_INF)
    # o_ref : (1, B, Ap)      softmax probabilities (padded lanes -> exactly 0)
    x = x_ref[0]                                   # (B, Hp) f32
    num_layers = w_ref.shape[0]
    inv_b = 1.0 / x.shape[0]

    def batch_norm(y, layer, which):
        # Training-mode BatchNorm1d, biased batch variance.
        # var = E[y^2] - E[y]^2: the two XLU reductions are independent.
        gamma = bn_ref[pl.ds(4 * layer + 2 * which, 1), :]      # (1, Hp)
        beta = bn_ref[pl.ds(4 * layer + 2 * which + 1, 1), :]   # (1, Hp)
        ey = jnp.sum(y, axis=0, keepdims=True) * inv_b
        ey2 = jnp.sum(y * y, axis=0, keepdims=True) * inv_b
        var = jnp.maximum(ey2 - ey * ey, 0.0)
        scale = gamma * jax.lax.rsqrt(var + BN_EPS)             # EUP rsqrt
        shift = beta - ey * scale
        return y * scale + shift                                # one FMA / elem

    # Residual blocks (L is a small compile-time constant -> static unroll).
    for l in range(num_layers):
        y = jnp.dot(x.astype(jnp.bfloat16), w_ref[l, 0],
                    preferred_element_type=jnp.float32)
        y = jnp.maximum(batch_norm(y, l, 0), 0.0)
        y = jnp.dot(y.astype(jnp.bfloat16), w_ref[l, 1],
                    preferred_element_type=jnp.float32)
        y = batch_norm(y, l, 1)
        x = jnp.maximum(x + y, 0.0)

    # Final linear + softmax over the (lane-dense, padded) action axis.
    logits = jnp.dot(x.astype(jnp.bfloat16), wf_ref[...],
                     preferred_element_type=jnp.float32) + bf_ref[...]
    m = jnp.max(logits, axis=1, keepdims=True)
    e = jnp.exp(logits - m)                        # padded lanes -> exactly 0
    denom = jnp.sum(e, axis=1, keepdims=True)
    o_ref[0] = e / denom                           # exact divide (rows sum to 1)


@jax.jit
def _policy_forward_padded(x_pad, w, bn, wf, bf):
    G, B, Hp = x_pad.shape
    L = w.shape[0]
    Ap = wf.shape[1]
    grid_spec = pltpu.PrefetchScalarGridSpec(
        num_scalar_prefetch=0,
        grid=(G,),
        in_specs=[
            # one sub-batch per grid step
            pl.BlockSpec((1, B, Hp), lambda g: (g, 0, 0)),
            # weights / BN params: constant index_map -> fetched once, resident
            pl.BlockSpec((L, 2, Hp, Hp), lambda g: (0, 0, 0, 0)),
            pl.BlockSpec((4 * L, Hp), lambda g: (0, 0)),
            pl.BlockSpec((Hp, Ap), lambda g: (0, 0)),
            pl.BlockSpec((1, Ap), lambda g: (0, 0)),
        ],
        out_specs=pl.BlockSpec((1, B, Ap), lambda g: (g, 0, 0)),
    )
    return pl.pallas_call(
        policy_kernel,
        out_shape=jax.ShapeDtypeStruct((G, B, Ap), jnp.float32),
        grid_spec=grid_spec,
        compiler_params=pltpu.CompilerParams(
            # sub-batches are independent -> shard across TCs (v7x)
            dimension_semantics=("parallel",)),
    )(x_pad, w, bn, wf, bf)


def policy_network_forward(x, params):
    """x: (B, H) single forward pass, or (G, B, H) G independent forward passes
    amortized into one pallas_call.  Returns probs over num_act actions."""
    squeeze = x.ndim == 2
    if squeeze:
        x = x[None]
    G, B, H = x.shape
    Hp = params["w"].shape[-1]
    A = params["num_act"]
    x_pad = jnp.zeros((G, B, Hp), jnp.float32).at[:, :, :H].set(x)
    out = _policy_forward_padded(x_pad, params["w"], params["bn"],
                                 params["wf"], params["bf"])
    out = out[:, :, :A]
    return out[0] if squeeze else out


def init_params(key, num_hidden, num_hidden_layers, num_act):
    """Logical (unpadded) f32 parameters.  PyTorch Linear weights (out,in) are
    represented pre-transposed as (in,out).  fc1/fc2 biases are omitted: they
    are mathematically inert before training-mode BatchNorm."""
    ks = jax.random.split(key, 8)
    L, H, A = num_hidden_layers, num_hidden, num_act
    s = 1.0 / jnp.sqrt(H)
    return {
        "w1": jax.random.uniform(ks[0], (L, H, H), jnp.float32, -s, s),
        "w2": jax.random.uniform(ks[1], (L, H, H), jnp.float32, -s, s),
        "g1": 1.0 + 0.1 * jax.random.normal(ks[2], (L, H), jnp.float32),
        "b1": 0.1 * jax.random.normal(ks[3], (L, H), jnp.float32),
        "g2": 1.0 + 0.1 * jax.random.normal(ks[4], (L, H), jnp.float32),
        "b2": 0.1 * jax.random.normal(ks[5], (L, H), jnp.float32),
        "wf": jax.random.uniform(ks[6], (H, A), jnp.float32, -s, s),
        "bf": jax.random.uniform(ks[7], (A,), jnp.float32, -s, s),
    }


def pack_params(p):
    """Pad H/A to lane multiples (128), cast matmul weights to bf16, and pack
    operands into few lane-aligned slabs.  Padding is exact: padded hidden
    lanes carry gamma=beta=0 (stay 0 through BN/ReLU/residual); padded action
    lanes carry bias=NEG_INF (exp underflows to 0 in the softmax)."""
    L, H, _ = p["w1"].shape
    A = p["wf"].shape[1]
    Hp = max(_round_up(H, LANE), LANE)
    Ap = max(_round_up(A, LANE), LANE)

    w = jnp.zeros((L, 2, Hp, Hp), jnp.float32)
    w = w.at[:, 0, :H, :H].set(p["w1"]).at[:, 1, :H, :H].set(p["w2"])
    w = w.astype(jnp.bfloat16)

    bn = jnp.zeros((4 * L, Hp), jnp.float32)
    bn = bn.at[0::4, :H].set(p["g1"])
    bn = bn.at[1::4, :H].set(p["b1"])
    bn = bn.at[2::4, :H].set(p["g2"])
    bn = bn.at[3::4, :H].set(p["b2"])

    wf = jnp.zeros((Hp, Ap), jnp.float32).at[:H, :A].set(p["wf"])
    wf = wf.astype(jnp.bfloat16)
    bf = jnp.full((1, Ap), NEG_INF, jnp.float32).at[0, :A].set(p["bf"])

    return {"w": w, "bn": bn, "wf": wf, "bf": bf,
            "num_hidden": H, "num_act": A}


def policy_network_reference(x, p):
    """Pure-JAX reference on the UNPADDED params, with the same bf16 matmul
    operands / f32 accumulation (verifies the padding is semantics-preserving)."""
    L = p["w1"].shape[0]

    def bn(y, gamma, beta):
        mean = jnp.mean(y, axis=0, keepdims=True)
        var = jnp.mean((y - mean) ** 2, axis=0, keepdims=True)
        return (y - mean) * jax.lax.rsqrt(var + BN_EPS) * gamma + beta

    def dot(a, b):
        return jnp.dot(a.astype(jnp.bfloat16), b.astype(jnp.bfloat16),
                       preferred_element_type=jnp.float32)

    for l in range(L):
        y = dot(x, p["w1"][l])
        y = jnp.maximum(bn(y, p["g1"][l], p["b1"][l]), 0.0)
        y = dot(y, p["w2"][l])
        y = bn(y, p["g2"][l], p["b2"][l])
        x = jnp.maximum(x + y, 0.0)
    logits = dot(x, p["wf"]) + p["bf"]
    return jax.nn.softmax(logits, axis=1)


if __name__ == "__main__":
    key = jax.random.PRNGKey(0)
    k_x, k_p = jax.random.split(key)

    batch = 8
    num_hidden = 32
    num_hidden_layers = 2
    num_act = 8
    num_groups = 4  # independent forward passes amortized into one pallas_call

    logical = init_params(k_p, num_hidden, num_hidden_layers, num_act)
    params = pack_params(logical)

    # (G, B, H): G independent sub-batches, each its own BN statistics.
    xs = jax.random.normal(k_x, (num_groups, batch, num_hidden), jnp.float32)

    probs = policy_network_forward(xs, params)
    jax.block_until_ready(probs)

    assert probs.shape == (num_groups, batch, num_act)
    # exact softmax divide -> rows sum to 1 to f32 precision
    assert jnp.allclose(jnp.sum(probs, axis=-1), 1.0, atol=1e-4)

    ref = jnp.stack([policy_network_reference(xs[g], logical)
                     for g in range(num_groups)])
    assert jnp.allclose(probs, ref, atol=3e-3, rtol=3e-3)

    # 2-D path matching the PyTorch module's forward(x: (B, H)) signature.
    probs2 = policy_network_forward(xs[0], params)
    jax.block_until_ready(probs2)
    assert probs2.shape == (batch, num_act)
    assert jnp.allclose(probs2, ref[0], atol=3e-3, rtol=3e-3)

    print("KERNEL_OK")
</pallas_src>

<mosaic_0001>
module attributes {stable_mosaic.version = 11 : i64} {
  func.func @policy_kernel(%arg0: i32, %arg1: memref<1x8x128xf32, #tpu.memory_space<vmem>>, %arg2: memref<2x2x128x128xbf16, #tpu.memory_space<vmem>>, %arg3: memref<8x128xf32, #tpu.memory_space<vmem>>, %arg4: memref<128x128xbf16, #tpu.memory_space<vmem>>, %arg5: memref<1x128xf32, #tpu.memory_space<vmem>>, %arg6: memref<1x8x128xf32, #tpu.memory_space<vmem>>) attributes {dimension_semantics = [#tpu.dimension_semantics<parallel>], iteration_bounds = array<i64: 4>, scalar_prefetch = 0 : i64, scratch_operands = 0 : i64, tpu.core_type = #tpu.core_type<tc>, window_params = [{transform_indices = @transform_0, window_bounds = array<i64: 1, 8, 128>}, {pipeline_mode = #tpu.pipeline_mode<synchronous>, transform_indices = @transform_1, window_bounds = array<i64: 2, 2, 128, 128>}, {pipeline_mode = #tpu.pipeline_mode<synchronous>, transform_indices = @transform_2, window_bounds = array<i64: 8, 128>}, {pipeline_mode = #tpu.pipeline_mode<synchronous>, transform_indices = @transform_3, window_bounds = array<i64: 128, 128>}, {pipeline_mode = #tpu.pipeline_mode<synchronous>, transform_indices = @transform_4, window_bounds = array<i64: 1, 128>}, {transform_indices = @transform_5, window_bounds = array<i64: 1, 8, 128>}]} {
    %c0 = arith.constant 0 : index
    %c0_0 = arith.constant 0 : index
    %c0_1 = arith.constant 0 : index
    %0 = vector.load %arg1[%c0, %c0_0, %c0_1] : memref<1x8x128xf32, #tpu.memory_space<vmem>>, vector<1x8x128xf32>
    %1 = vector.shape_cast %0 : vector<1x8x128xf32> to vector<8x128xf32>
    %2 = arith.truncf %1 : vector<8x128xf32> to vector<8x128xbf16>
    %c0_2 = arith.constant 0 : index
    %c0_3 = arith.constant 0 : index
    %c0_4 = arith.constant 0 : index
    %c0_5 = arith.constant 0 : index
    %3 = vector.load %arg2[%c0_2, %c0_3, %c0_4, %c0_5] : memref<2x2x128x128xbf16, #tpu.memory_space<vmem>>, vector<1x1x128x128xbf16>
    %4 = vector.shape_cast %3 : vector<1x1x128x128xbf16> to vector<128x128xbf16>
    %cst = arith.constant dense<0.000000e+00> : vector<8x128xf32>
    %5 = tpu.matmul %2, %4, %cst {dimension_numbers = #tpu.dot_dimension_numbers<[1], [0], [0], [1], [0, 0, 1, 1], [], []>} : vector<8x128xbf16>, vector<128x128xbf16>, vector<8x128xf32> -> vector<8x128xf32>
    %c0_6 = arith.constant 0 : index
    %c0_7 = arith.constant 0 : index
    %6 = vector.load %arg3[%c0_6, %c0_7] : memref<8x128xf32, #tpu.memory_space<vmem>>, vector<1x128xf32>
    %c1 = arith.constant 1 : index
    %c0_8 = arith.constant 0 : index
    %7 = vector.load %arg3[%c1, %c0_8] : memref<8x128xf32, #tpu.memory_space<vmem>>, vector<1x128xf32>
    %cst_9 = arith.constant dense<0.000000e+00> : vector<128xf32>
    %8 = vector.multi_reduction <add>, %5, %cst_9 [0] : vector<8x128xf32> to vector<128xf32>
    %9 = vector.shape_cast %8 : vector<128xf32> to vector<1x128xf32>
    %cst_10 = arith.constant 1.250000e-01 : f32
    %10 = vector.broadcast %cst_10 : f32 to vector<1x128xf32>
    %11 = arith.mulf %9, %10 : vector<1x128xf32>
    %12 = arith.mulf %5, %5 : vector<8x128xf32>
    %cst_11 = arith.constant dense<0.000000e+00> : vector<128xf32>
    %13 = vector.multi_reduction <add>, %12, %cst_11 [0] : vector<8x128xf32> to vector<128xf32>
    %14 = vector.shape_cast %13 : vector<128xf32> to vector<1x128xf32>
    %cst_12 = arith.constant 1.250000e-01 : f32
    %15 = vector.broadcast %cst_12 : f32 to vector<1x128xf32>
    %16 = arith.mulf %14, %15 : vector<1x128xf32>
    %17 = arith.mulf %11, %11 : vector<1x128xf32>
    %18 = arith.subf %16, %17 : vector<1x128xf32>
    %cst_13 = arith.constant 0.000000e+00 : f32
    %19 = vector.broadcast %cst_13 : f32 to vector<1x128xf32>
    %20 = arith.maximumf %18, %19 : vector<1x128xf32>
    %cst_14 = arith.constant 9.99999974E-6 : f32
    %21 = vector.broadcast %cst_14 : f32 to vector<1x128xf32>
    %22 = arith.addf %20, %21 : vector<1x128xf32>
    %23 = math.rsqrt %22 : vector<1x128xf32>
    %24 = arith.mulf %6, %23 : vector<1x128xf32>
    %25 = arith.mulf %11, %24 : vector<1x128xf32>
    %26 = arith.subf %7, %25 : vector<1x128xf32>
    %27 = vector.broadcast %24 : vector<1x128xf32> to vector<8x128xf32>
    %28 = arith.mulf %5, %27 : vector<8x128xf32>
    %29 = vector.broadcast %26 : vector<1x128xf32> to vector<8x128xf32>
    %30 = arith.addf %28, %29 : vector<8x128xf32>
    %cst_15 = arith.constant 0.000000e+00 : f32
    %31 = vector.broadcast %cst_15 : f32 to vector<8x128xf32>
    %32 = arith.maximumf %30, %31 : vector<8x128xf32>
    %33 = arith.truncf %32 : vector<8x128xf32> to vector<8x128xbf16>
    %c0_16 = arith.constant 0 : index
    %c1_17 = arith.constant 1 : index
    %c0_18 = arith.constant 0 : index
    %c0_19 = arith.constant 0 : index
    %34 = vector.load %arg2[%c0_16, %c1_17, %c0_18, %c0_19] : memref<2x2x128x128xbf16, #tpu.memory_space<vmem>>, vector<1x1x128x128xbf16>
    %35 = vector.shape_cast %34 : vector<1x1x128x128xbf16> to vector<128x128xbf16>
    %cst_20 = arith.constant dense<0.000000e+00> : vector<8x128xf32>
    %36 = tpu.matmul %33, %35, %cst_20 {dimension_numbers = #tpu.dot_dimension_numbers<[1], [0], [0], [1], [0, 0, 1, 1], [], []>} : vector<8x128xbf16>, vector<128x128xbf16>, vector<8x128xf32> -> vector<8x128xf32>
    %c2 = arith.constant 2 : index
    %c0_21 = arith.constant 0 : index
    %37 = vector.load %arg3[%c2, %c0_21] : memref<8x128xf32, #tpu.memory_space<vmem>>, vector<1x128xf32>
    %c3 = arith.constant 3 : index
    %c0_22 = arith.constant 0 : index
    %38 = vector.load %arg3[%c3, %c0_22] : memref<8x128xf32, #tpu.memory_space<vmem>>, vector<1x128xf32>
    %cst_23 = arith.constant dense<0.000000e+00> : vector<128xf32>
    %39 = vector.multi_reduction <add>, %36, %cst_23 [0] : vector<8x128xf32> to vector<128xf32>
    %40 = vector.shape_cast %39 : vector<128xf32> to vector<1x128xf32>
    %cst_24 = arith.constant 1.250000e-01 : f32
    %41 = vector.broadcast %cst_24 : f32 to vector<1x128xf32>
    %42 = arith.mulf %40, %41 : vector<1x128xf32>
    %43 = arith.mulf %36, %36 : vector<8x128xf32>
    %cst_25 = arith.constant dense<0.000000e+00> : vector<128xf32>
    %44 = vector.multi_reduction <add>, %43, %cst_25 [0] : vector<8x128xf32> to vector<128xf32>
    %45 = vector.shape_cast %44 : vector<128xf32> to vector<1x128xf32>
    %cst_26 = arith.constant 1.250000e-01 : f32
    %46 = vector.broadcast %cst_26 : f32 to vector<1x128xf32>
    %47 = arith.mulf %45, %46 : vector<1x128xf32>
    %48 = arith.mulf %42, %42 : vector<1x128xf32>
    %49 = arith.subf %47, %48 : vector<1x128xf32>
    %cst_27 = arith.constant 0.000000e+00 : f32
    %50 = vector.broadcast %cst_27 : f32 to vector<1x128xf32>
    %51 = arith.maximumf %49, %50 : vector<1x128xf32>
    %cst_28 = arith.constant 9.99999974E-6 : f32
    %52 = vector.broadcast %cst_28 : f32 to vector<1x128xf32>
    %53 = arith.addf %51, %52 : vector<1x128xf32>
    %54 = math.rsqrt %53 : vector<1x128xf32>
    %55 = arith.mulf %37, %54 : vector<1x128xf32>
    %56 = arith.mulf %42, %55 : vector<1x128xf32>
    %57 = arith.subf %38, %56 : vector<1x128xf32>
    %58 = vector.broadcast %55 : vector<1x128xf32> to vector<8x128xf32>
    %59 = arith.mulf %36, %58 : vector<8x128xf32>
    %60 = vector.broadcast %57 : vector<1x128xf32> to vector<8x128xf32>
    %61 = arith.addf %59, %60 : vector<8x128xf32>
    %62 = arith.addf %1, %61 : vector<8x128xf32>
    %cst_29 = arith.constant 0.000000e+00 : f32
    %63 = vector.broadcast %cst_29 : f32 to vector<8x128xf32>
    %64 = arith.maximumf %62, %63 : vector<8x128xf32>
    %65 = arith.truncf %64 : vector<8x128xf32> to vector<8x128xbf16>
    %c1_30 = arith.constant 1 : index
    %c0_31 = arith.constant 0 : index
    %c0_32 = arith.constant 0 : index
    %c0_33 = arith.constant 0 : index
    %66 = vector.load %arg2[%c1_30, %c0_31, %c0_32, %c0_33] : memref<2x2x128x128xbf16, #tpu.memory_space<vmem>>, vector<1x1x128x128xbf16>
    %67 = vector.shape_cast %66 : vector<1x1x128x128xbf16> to vector<128x128xbf16>
    %cst_34 = arith.constant dense<0.000000e+00> : vector<8x128xf32>
    %68 = tpu.matmul %65, %67, %cst_34 {dimension_numbers = #tpu.dot_dimension_numbers<[1], [0], [0], [1], [0, 0, 1, 1], [], []>} : vector<8x128xbf16>, vector<128x128xbf16>, vector<8x128xf32> -> vector<8x128xf32>
    %c4 = arith.constant 4 : index
    %c0_35 = arith.constant 0 : index
    %69 = vector.load %arg3[%c4, %c0_35] : memref<8x128xf32, #tpu.memory_space<vmem>>, vector<1x128xf32>
    %c5 = arith.constant 5 : index
    %c0_36 = arith.constant 0 : index
    %70 = vector.load %arg3[%c5, %c0_36] : memref<8x128xf32, #tpu.memory_space<vmem>>, vector<1x128xf32>
    %cst_37 = arith.constant dense<0.000000e+00> : vector<128xf32>
    %71 = vector.multi_reduction <add>, %68, %cst_37 [0] : vector<8x128xf32> to vector<128xf32>
    %72 = vector.shape_cast %71 : vector<128xf32> to vector<1x128xf32>
    %cst_38 = arith.constant 1.250000e-01 : f32
    %73 = vector.broadcast %cst_38 : f32 to vector<1x128xf32>
    %74 = arith.mulf %72, %73 : vector<1x128xf32>
    %75 = arith.mulf %68, %68 : vector<8x128xf32>
    %cst_39 = arith.constant dense<0.000000e+00> : vector<128xf32>
    %76 = vector.multi_reduction <add>, %75, %cst_39 [0] : vector<8x128xf32> to vector<128xf32>
    %77 = vector.shape_cast %76 : vector<128xf32> to vector<1x128xf32>
    %cst_40 = arith.constant 1.250000e-01 : f32
    %78 = vector.broadcast %cst_40 : f32 to vector<1x128xf32>
    %79 = arith.mulf %77, %78 : vector<1x128xf32>
    %80 = arith.mulf %74, %74 : vector<1x128xf32>
    %81 = arith.subf %79, %80 : vector<1x128xf32>
    %cst_41 = arith.constant 0.000000e+00 : f32
    %82 = vector.broadcast %cst_41 : f32 to vector<1x128xf32>
    %83 = arith.maximumf %81, %82 : vector<1x128xf32>
    %cst_42 = arith.constant 9.99999974E-6 : f32
    %84 = vector.broadcast %cst_42 : f32 to vector<1x128xf32>
    %85 = arith.addf %83, %84 : vector<1x128xf32>
    %86 = math.rsqrt %85 : vector<1x128xf32>
    %87 = arith.mulf %69, %86 : vector<1x128xf32>
    %88 = arith.mulf %74, %87 : vector<1x128xf32>
    %89 = arith.subf %70, %88 : vector<1x128xf32>
    %90 = vector.broadcast %87 : vector<1x128xf32> to vector<8x128xf32>
    %91 = arith.mulf %68, %90 : vector<8x128xf32>
    %92 = vector.broadcast %89 : vector<1x128xf32> to vector<8x128xf32>
    %93 = arith.addf %91, %92 : vector<8x128xf32>
    %cst_43 = arith.constant 0.000000e+00 : f32
    %94 = vector.broadcast %cst_43 : f32 to vector<8x128xf32>
    %95 = arith.maximumf %93, %94 : vector<8x128xf32>
    %96 = arith.truncf %95 : vector<8x128xf32> to vector<8x128xbf16>
    %c1_44 = arith.constant 1 : index
    %c1_45 = arith.constant 1 : index
    %c0_46 = arith.constant 0 : index
    %c0_47 = arith.constant 0 : index
    %97 = vector.load %arg2[%c1_44, %c1_45, %c0_46, %c0_47] : memref<2x2x128x128xbf16, #tpu.memory_space<vmem>>, vector<1x1x128x128xbf16>
    %98 = vector.shape_cast %97 : vector<1x1x128x128xbf16> to vector<128x128xbf16>
    %cst_48 = arith.constant dense<0.000000e+00> : vector<8x128xf32>
    %99 = tpu.matmul %96, %98, %cst_48 {dimension_numbers = #tpu.dot_dimension_numbers<[1], [0], [0], [1], [0, 0, 1, 1], [], []>} : vector<8x128xbf16>, vector<128x128xbf16>, vector<8x128xf32> -> vector<8x128xf32>
    %c6 = arith.constant 6 : index
    %c0_49 = arith.constant 0 : index
    %100 = vector.load %arg3[%c6, %c0_49] : memref<8x128xf32, #tpu.memory_space<vmem>>, vector<1x128xf32>
    %c7 = arith.constant 7 : index
    %c0_50 = arith.constant 0 : index
    %101 = vector.load %arg3[%c7, %c0_50] : memref<8x128xf32, #tpu.memory_space<vmem>>, vector<1x128xf32>
    %cst_51 = arith.constant dense<0.000000e+00> : vector<128xf32>
    %102 = vector.multi_reduction <add>, %99, %cst_51 [0] : vector<8x128xf32> to vector<128xf32>
    %103 = vector.shape_cast %102 : vector<128xf32> to vector<1x128xf32>
    %cst_52 = arith.constant 1.250000e-01 : f32
    %104 = vector.broadcast %cst_52 : f32 to vector<1x128xf32>
    %105 = arith.mulf %103, %104 : vector<1x128xf32>
    %106 = arith.mulf %99, %99 : vector<8x128xf32>
    %cst_53 = arith.constant dense<0.000000e+00> : vector<128xf32>
    %107 = vector.multi_reduction <add>, %106, %cst_53 [0] : vector<8x128xf32> to vector<128xf32>
    %108 = vector.shape_cast %107 : vector<128xf32> to vector<1x128xf32>
    %cst_54 = arith.constant 1.250000e-01 : f32
    %109 = vector.broadcast %cst_54 : f32 to vector<1x128xf32>
    %110 = arith.mulf %108, %109 : vector<1x128xf32>
    %111 = arith.mulf %105, %105 : vector<1x128xf32>
    %112 = arith.subf %110, %111 : vector<1x128xf32>
    %cst_55 = arith.constant 0.000000e+00 : f32
    %113 = vector.broadcast %cst_55 : f32 to vector<1x128xf32>
    %114 = arith.maximumf %112, %113 : vector<1x128xf32>
    %cst_56 = arith.constant 9.99999974E-6 : f32
    %115 = vector.broadcast %cst_56 : f32 to vector<1x128xf32>
    %116 = arith.addf %114, %115 : vector<1x128xf32>
    %117 = math.rsqrt %116 : vector<1x128xf32>
    %118 = arith.mulf %100, %117 : vector<1x128xf32>
    %119 = arith.mulf %105, %118 : vector<1x128xf32>
    %120 = arith.subf %101, %119 : vector<1x128xf32>
    %121 = vector.broadcast %118 : vector<1x128xf32> to vector<8x128xf32>
    %122 = arith.mulf %99, %121 : vector<8x128xf32>
    %123 = vector.broadcast %120 : vector<1x128xf32> to vector<8x128xf32>
    %124 = arith.addf %122, %123 : vector<8x128xf32>
    %125 = arith.addf %64, %124 : vector<8x128xf32>
    %cst_57 = arith.constant 0.000000e+00 : f32
    %126 = vector.broadcast %cst_57 : f32 to vector<8x128xf32>
    %127 = arith.maximumf %125, %126 : vector<8x128xf32>
    %128 = arith.truncf %127 : vector<8x128xf32> to vector<8x128xbf16>
    %c0_58 = arith.constant 0 : index
    %c0_59 = arith.constant 0 : index
    %129 = vector.load %arg4[%c0_58, %c0_59] : memref<128x128xbf16, #tpu.memory_space<vmem>>, vector<128x128xbf16>
    %cst_60 = arith.constant dense<0.000000e+00> : vector<8x128xf32>
    %130 = tpu.matmul %128, %129, %cst_60 {dimension_numbers = #tpu.dot_dimension_numbers<[1], [0], [0], [1], [0, 0, 1, 1], [], []>} : vector<8x128xbf16>, vector<128x128xbf16>, vector<8x128xf32> -> vector<8x128xf32>
    %c0_61 = arith.constant 0 : index
    %c0_62 = arith.constant 0 : index
    %131 = vector.load %arg5[%c0_61, %c0_62] : memref<1x128xf32, #tpu.memory_space<vmem>>, vector<1x128xf32>
    %132 = vector.broadcast %131 : vector<1x128xf32> to vector<8x128xf32>
    %133 = arith.addf %130, %132 : vector<8x128xf32>
    %cst_63 = arith.constant dense<0xFF800000> : vector<8xf32>
    %134 = vector.multi_reduction <maximumf>, %133, %cst_63 [1] : vector<8x128xf32> to vector<8xf32>
    %135 = vector.shape_cast %134 : vector<8xf32> to vector<8x1xf32>
    %136 = vector.broadcast %135 : vector<8x1xf32> to vector<8x128xf32>
    %137 = arith.subf %133, %136 : vector<8x128xf32>
    %138 = math.exp %137 : vector<8x128xf32>
    %cst_64 = arith.constant dense<0.000000e+00> : vector<8xf32>
    %139 = vector.multi_reduction <add>, %138, %cst_64 [1] : vector<8x128xf32> to vector<8xf32>
    %140 = vector.shape_cast %139 : vector<8xf32> to vector<8x1xf32>
    %141 = vector.broadcast %140 : vector<8x1xf32> to vector<8x128xf32>
    %142 = arith.divf %138, %141 : vector<8x128xf32>
    %c0_65 = arith.constant 0 : index
    %c0_66 = arith.constant 0 : index
    %c0_67 = arith.constant 0 : index
    %143 = vector.load %arg6[%c0_65, %c0_66, %c0_67] : memref<1x8x128xf32, #tpu.memory_space<vmem>>, vector<1x8x128xf32>
    %144 = vector.shape_cast %143 : vector<1x8x128xf32> to vector<8x128xf32>
    %145 = vector.shape_cast %142 : vector<8x128xf32> to vector<1x8x128xf32>
    tpu.vector_store %arg6[%c0_65, %c0_66, %c0_67], %145 {strides = array<i32>} : memref<1x8x128xf32, #tpu.memory_space<vmem>>, vector<1x8x128xf32>,
    return
  }
  func.func @transform_0(%arg0: i32) -> (i32, i32, i32) {
    %c0_i32 = arith.constant 0 : i32
    %c0_i32_0 = arith.constant 0 : i32
    %c0_i32_1 = arith.constant 0 : i32
    return %arg0, %c0_i32, %c0_i32_0 : i32, i32, i32
  }
  func.func @transform_1(%arg0: i32) -> (i32, i32, i32, i32) {
    %c0_i32 = arith.constant 0 : i32
    %c0_i32_0 = arith.constant 0 : i32
    %c0_i32_1 = arith.constant 0 : i32
    %c0_i32_2 = arith.constant 0 : i32
    %c0_i32_3 = arith.constant 0 : i32
    return %c0_i32, %c0_i32_0, %c0_i32_1, %c0_i32_2 : i32, i32, i32, i32
  }
  func.func @transform_2(%arg0: i32) -> (i32, i32) {
    %c0_i32 = arith.constant 0 : i32
    %c0_i32_0 = arith.constant 0 : i32
    %c0_i32_1 = arith.constant 0 : i32
    return %c0_i32, %c0_i32_0 : i32, i32
  }
  func.func @transform_3(%arg0: i32) -> (i32, i32) {
    %c0_i32 = arith.constant 0 : i32
    %c0_i32_0 = arith.constant 0 : i32
    %c0_i32_1 = arith.constant 0 : i32
    return %c0_i32, %c0_i32_0 : i32, i32
  }
  func.func @transform_4(%arg0: i32) -> (i32, i32) {
    %c0_i32 = arith.constant 0 : i32
    %c0_i32_0 = arith.constant 0 : i32
    %c0_i32_1 = arith.constant 0 : i32
    return %c0_i32, %c0_i32_0 : i32, i32
  }
  func.func @transform_5(%arg0: i32) -> (i32, i32, i32) {
    %c0_i32 = arith.constant 0 : i32
    %c0_i32_0 = arith.constant 0 : i32
    %c0_i32_1 = arith.constant 0 : i32
    return %arg0, %c0_i32, %c0_i32_0 : i32, i32, i32
  }
}

</mosaic_0001>

<bundles_post_ra>
// kernel: _policy_forward_padded.1
= control target key start
LH: loop header
LB: loop body
LE: loop exit
PB: predicated region body
PF: predicated region fallthrough
CT: control target
= control target key end

     0   :  { %10 = vsyncpa [#allocation3], 0  ;;  %s1992_s0 = inlined_call_operand.hbm [shape: f32[4,8,128], index: 0, kind: input, shape index: {}]   ;;  %s1993_s1 = inlined_call_operand.hbm [shape: bf16[2,2,128,128], index: 1, kind: input, shape index: {}]   ;;  %s1994_s2 = inlined_call_operand.hbm [shape: f32[8,128], index: 2, kind: input, shape index: {}]   ;;  %s1995_s3 = inlined_call_operand.hbm [shape: bf16[128,128], index: 3, kind: input, shape index: {}]   ;;  %s1996_s4 = inlined_call_operand.vmem [shape: f32[1,128], index: 4, kind: input, shape index: {}]   ;;  %s1997_s5 = inlined_call_operand.hbm [shape: f32[4,8,128], index: 5, kind: output, shape index: {}]  }
   0x1   :  { %12 = vsyncpa [#allocation3 + $0x1], 0 }
   0x2   :  { %13 = vsyncpa [#allocation6], 0 }
   0x3   :  { %14 = vsyncpa [#allocation9], 0 }
   0x4   :  { %15 = vsyncpa [#allocation4], 0 }
   0x5   :  { %17 = vsyncpa [#allocation4 + $0x1], 0  ;;  %s1654_s18 = smov 0   ;;  %s1656_s19 = smov 0  }
   0x6   :  { %s1658_s20 = smov 0   ;;  %s1660_s21 = smov 0  }
   0x7 LB: > { %s1675_s22 = sadd.s32 4294967295, %s1613_s21   ;;  %s1088_s23 = sadd.s32 4294967294, %s1613_s21   ;;  %s1613_s21 = sphi %s1660_s21, %s2019_s21   ;;  %s1609_s20 = sphi %s1658_s20, %s2018_s20   ;;  %s1605_s19 = sphi %s1656_s19, %s2017_s19   ;;  %s1601_s18 = sphi %s1654_s18, %s2016_s18  }
   0x8   : > { %p43_p0 = scmp.ne.s32.totalorder %s1605_s19, %s1601_s18  ;;  %p1998_p1 = scmp.eq.s32.totalorder %s1675_s22, 0 }
   0x9   : > { %p157_p3 = scmp.eq.s32.totalorder %s1088_s23, 3  ;;  %p1089_p5 = scmp.ge.s32.totalorder %s1613_s21, 1 }
   0xa   : > { %p1684_p4 = por %p1998_p1, %p43_p0  ;;  %p164_p7 = scmp.lt.s32.totalorder %s1613_s21, 5 }
   0xb   : > { %p1689_p6 = por %p157_p3, %p43_p0  ;;  %s1615_s27 = smov [#allocation5]  }
   0xc   : > { %s2001_s24 = scalar_select %p1684_p4, 1, 0 }
   0xd   : > { %s2002_s25 = scalar_select %p1689_p6, 1, 0 }
   0xe   : > { %p1694_p8 = pnand %p1089_p5, %p164_p7  ;;  %s176_s28 = sshll.u32 %s1615_s27, 4  ;;  %s1698_s28 = int_to_ptr.vmem [resolvable:$true] %s176_s28 }
   0xf   : > { %s1616_s30 = smov [#allocation7]   ;;  %s1617_s7 = smov [#allocation8]  }
  0x10   : > { %s2003_s26 = scalar_select %p1694_p8, 1, 0 }
  0x11   : > { %p1308_p9 = pneg %p1694_p8  ;;  %s190_s6 = sshll.u32 %s1616_s30, 4  ;;  %s1708_s6 = int_to_ptr.vmem [resolvable:$true] %s190_s6 }
  0x12   : > { %s1710_s8 = sshll.u32 %s1617_s7, 4  ;;  %s1425_s11 = scalar_lea.hbm %s1993_s1, 4096  ;;  %s201_s8 = int_to_ptr.vmem [resolvable:$true] %s1710_s8 }
  0x13   : > { %p1704_p10 = pnand %p1308_p9, %p1998_p1  ;;  %p1426_p11 = scmp.ne.s32.totalorder %s1993_s1, %s1425_s11 }
  0x14   : > { %p1432_p3 = scmp.lt.u32.totalorder %s1425_s11, %s1993_s1 }
  0x15   : > { %p1720_p12 = pneg %p1704_p10 }
  0x17   : > { %p1428_p13 = pnand %p1720_p12, %p1426_p11 }
  0x19   : > { %p1429_p0 = pneg %p1428_p13 }
  0x1b   : > { %p1434_p5 = pnand %p1432_p3, %p1429_p0 }
  0x1d   : > { %1437 = shalt.err (!%p1434_p5)
}
  0x1e   : > { %s1438_s17 = scalar_lea.vmem %s1698_s28, 4096  ;;  %p1446_p2 = scmp.lt.s32.totalorder %s1698_s28, %s1698_s28 }
  0x1f   : > { %p1439_p7 = scmp.ne.s32.totalorder %s1698_s28, %s1438_s17  ;;  %p1447_p6 = scmp.lt.s32.totalorder %s1438_s17, %s1438_s17 }
  0x21   : > { %p1441_p9 = pnand %p1439_p7, %p1720_p12  ;;  %p1448_p11 = por %p1447_p6, %p1446_p2 }
  0x23   : > { %p1442_p1 = pneg %p1441_p9 }
  0x25   : > { %p1449_p13 = pnand %p1448_p11, %p1442_p1 }
  0x27   : > { %1452 = shalt.err (!%p1449_p13)
}
  0x28   : > { %s1618_s23 = smov 64   ;;  %s1619_s27 = smov 4  }
  0x29   : > { %1311 = dma.hbm_to_vmem [thread:$0]  (!%p1704_p10), %s1993_s1, 4096, %s1698_s28, [#allocation6], %s1618_s23, %s1618_s23, %s1619_s27  }
  0x2a   : > { %s1453_s11 = scalar_lea.hbm %s1994_s2, 128 }
  0x2b   : > { %p1454_p1 = scmp.ne.s32.totalorder %s1994_s2, %s1453_s11  ;;  %p1460_p0 = scmp.lt.u32.totalorder %s1453_s11, %s1994_s2 }
  0x2d   : > { %p1456_p2 = pnand %p1454_p1, %p1720_p12 }
  0x2f   : > { %p1457_p6 = pneg %p1456_p2 }
  0x31   : > { %p1462_p3 = pnand %p1460_p0, %p1457_p6 }
  0x33   : > { %1465 = shalt.err (!%p1462_p3)
}
  0x34   : > { %s1466_s28 = scalar_lea.vmem %s1708_s6, 128  ;;  %p1474_p11 = scmp.lt.s32.totalorder %s1708_s6, %s1708_s6 }
  0x35   : > { %p1467_p5 = scmp.ne.s32.totalorder %s1708_s6, %s1466_s28  ;;  %p1475_p13 = scmp.lt.s32.totalorder %s1466_s28, %s1466_s28 }
  0x37   : > { %p1469_p7 = pnand %p1467_p5, %p1720_p12  ;;  %p1476_p1 = por %p1475_p13, %p1474_p11 }
  0x39   : > { %p1470_p9 = pneg %p1469_p7 }
  0x3b   : > { %p1477_p2 = pnand %p1476_p1, %p1470_p9 }
  0x3d   : > { %1480 = shalt.err (!%p1477_p2)
}
  0x3e   : > { %1314 = dma.hbm_to_vmem [thread:$0]  (!%p1704_p10), %s1994_s2, 128, %s1708_s6, [#allocation6]  }
  0x3f   : > { %s1481_s10 = scalar_lea.hbm %s1995_s3, 1024 }
  0x40   : > { %p1482_p6 = scmp.ne.s32.totalorder %s1995_s3, %s1481_s10  ;;  %p1488_p5 = scmp.lt.u32.totalorder %s1481_s10, %s1995_s3 }
  0x42   : > { %p1484_p0 = pnand %p1482_p6, %p1720_p12 }
  0x44   : > { %p1485_p3 = pneg %p1484_p0 }
  0x46   : > { %p1490_p7 = pnand %p1488_p5, %p1485_p3 }
  0x48   : > { %1493 = shalt.err (!%p1490_p7)
}
  0x49   : > { %s1494_s16 = scalar_lea.vmem %s201_s8, 1024  ;;  %p1502_p1 = scmp.lt.s32.totalorder %s201_s8, %s201_s8 }
  0x4a   : > { %p1495_p9 = scmp.ne.s32.totalorder %s201_s8, %s1494_s16  ;;  %p1503_p2 = scmp.lt.s32.totalorder %s1494_s16, %s1494_s16 }
  0x4c   : > { %p1497_p11 = pnand %p1495_p9, %p1720_p12  ;;  %p1504_p4 = por %p1503_p2, %p1502_p1 }
  0x4e   : > { %p1498_p13 = pneg %p1497_p11 }
  0x50   : > { %p1505_p8 = pnand %p1504_p4, %p1498_p13 }
  0x52   : > { %1508 = shalt.err (!%p1505_p8)
}
  0x53   : > { %1317 = dma.hbm_to_vmem [thread:$0]  (!%p1704_p10), %s1995_s3, 1024, %s201_s8, [#allocation9], %s1618_s23, %s1618_s23, %s1619_s27  }
  0x54   : > { %s1790_s14 = sadd.s32 1, %s1613_s21   ;;  %s30_s17 = sadd.s32 1, %s1609_s20 }
  0x55   : > { %s27_s29 = ssub.s32 %s1613_s21, %s1790_s14  ;;  %p37_p8 = scmp.ne.s32.totalorder %s1609_s20, %s1605_s19 }
  0x56   : > { %p28_p4 = scmp.eq.s32.totalorder %s27_s29, 0  ;;  %p38_p12 = scmp.eq.s32.totalorder %s1613_s21, 0 }
  0x57   : > { %p1329_p6 = scmp.lt.s32.totalorder %s1613_s21, 4  ;;  %p2006_p3 = scmp.eq.s32.totalorder %s1675_s22, 3 }
  0x58   : > { %s1800_s30 = scalar_select %p28_p4, %s1609_s20, %s30_s17  }
  0x59   : > { %p39_p0 = por %p38_p12, %p37_p8  ;;  %p1804_p5 = por %p2006_p3, %p37_p8 }
  0x5a   : > { %s217_s9 = sand.u32 1, %s1609_s20   ;;  %s1095_s10 = sshll.u32 %s1613_s21, 7 }
  0x5b   : > { %s1094_s8 = sshll.u32 %s217_s9, 3  ;;  %s1813_s11 = scalar_lea.hbm %s1992_s0, %s1095_s10 }
  0x5c   : > { %s221_s12 = scalar_lea.vmem [#allocation2], %s1094_s8  ;;  %p1815_p10 = pnand %p1329_p6, %p39_p0 }
  0x5d   : > { %s228_s13 = sshll.u32 %s221_s12, 4  ;;  %s218_s16 = scalar_lea.sflag [#allocation3], %s217_s9  ;;  %s1819_s13 = int_to_ptr.vmem [resolvable:$true] %s228_s13 }
  0x5e   : > { %s1509_s6 = scalar_lea.hbm %s1813_s11, 128  ;;  %p1511_p9 = pneg %p1815_p10 }
  0x5f   : > { %p1510_p7 = scmp.ne.s32.totalorder %s1813_s11, %s1509_s6  ;;  %s1514_s17 = scalar_lea.hbm %s1992_s0, 512 }
  0x60   : > { %p1515_p1 = scmp.lt.u32.totalorder %s1813_s11, %s1992_s0  ;;  %p1516_p2 = scmp.lt.u32.totalorder %s1514_s17, %s1509_s6 }
  0x61   : > { %p1512_p11 = pnand %p1511_p9, %p1510_p7  ;;  %p1518_p8 = scmp.lt.u32.totalorder %s1509_s6, %s1813_s11 }
  0x62   : > { %p1517_p4 = por %p1516_p2, %p1515_p1 }
  0x63   : > { %p1513_p13 = pneg %p1512_p11 }
  0x64   : > { %p1519_p12 = por %p1518_p8, %p1517_p4 }
  0x66   : > { %p1520_p6 = pnand %p1519_p12, %p1513_p13 }
  0x68   : > { %1523 = shalt.err (!%p1520_p6)
}
  0x69   : > { %s1524_s9 = scalar_lea.vmem %s1819_s13, 128  ;;  %s1620_s23 = smov [#allocation2]  }
  0x6a   : > { %p1525_p0 = scmp.ne.s32.totalorder %s1819_s13, %s1524_s9  ;;  %s1529_s27 = sshll.u32 %s1620_s23, 4  ;;  %s1530_s27 = int_to_ptr.vmem [resolvable:$false] %s1529_s27 }
  0x6b   : > { %s1531_s12 = scalar_lea.vmem %s1530_s27, 256  ;;  %p1532_p11 = scmp.lt.s32.totalorder %s1819_s13, %s1530_s27 }
  0x6c   : > { %p1527_p3 = pnand %p1525_p0, %p1511_p9  ;;  %p1533_p1 = scmp.lt.s32.totalorder %s1531_s12, %s1524_s9 }
  0x6e   : > { %p1528_p7 = pneg %p1527_p3  ;;  %p1534_p2 = por %p1533_p1, %p1532_p11 }
  0x70   : > { %p1535_p4 = pnand %p1534_p2, %p1528_p7 }
  0x72   : > { %1538 = shalt.err (!%p1535_p4)
}
  0x73   : > { %1321 = dma.hbm_to_vmem [thread:$0]  (!%p1815_p10), %s1813_s11, 128, %s1819_s13, %s218_s16  }
  0x74   : > { %p2009_p13 = scmp.ne.s32.totalorder %s2003_s26, 0 }
  0x75   : > { %s1849_s6 = sand.u32 (!%p2009_p13), 1, %s1605_s19   ;;  %p2010_p9 = scmp.ne.s32.totalorder (!%p2009_p13), %s2001_s24, 0 }
  0x76   : > { %237 = sbr.rel (%p2009_p13) target bundleno = 1747 (0x6d3), region = 40  ;;  %s1097_s28 = sshll.u32 (!%p2009_p13), %s1849_s6, 3 }
  0x77   : > { %s240_s29 = scalar_lea.sflag (!%p2009_p13), [#allocation3], %s1849_s6  ;;  %s1855_s17 = scalar_lea.vmem (!%p2009_p13), [#allocation2], %s1097_s28 }
  0x7d   : > { %1584 = dma.done.wait (%p2010_p9), %s240_s29, 128  }
  0x7e   : > { %1586 = vsyncadd (%p2010_p9), %s240_s29, 4294967168  ;;  %p2011_p10 = scmp.eq.s32.totalorder %s1675_s22, 0 }
  0x80   : > { %1588 = dma.done.wait (%p2011_p10), [#allocation6], 4224   ;;  %p2012_p8 = pmov %p2011_p10 }
  0x82   : > { %1590 = vsyncadd (%p2012_p8), [#allocation6], 4294963072  ;;  %p2013_p12 = pmov %p2012_p8 }
  0x83   : > { %p2014_p6 = pmov %p2012_p8 }
  0x84   : > { %1592 = dma.done.wait (%p2013_p12), [#allocation9], 1024  }
  0x85   : > { %1594 = vsyncadd (%p2014_p6), [#allocation9], 4294966272  ;;  %v1621_v0 = vmov 0.0   ;;  %vm1622_vm0 = vmmov 0   ;;  %v1373_v1 = vld [vmem:[#allocation5] sm:$0xff]   ;;  %v1374_v2 = vld [vmem:[#allocation5 + $0x8] sm:$0xff]   ;;  %v414_v42 = vlaneseq }
  0x86   : > { %1192 = vmatprep.subr.bf16.mxu0 %v1621_v0  ;;  %1208 = vmatprep.mubr.msk.bf16.mxu0 %vm1622_vm0, %v1621_v0  ;;  %v1375_v3 = vld [vmem:[#allocation5 + $0x10] sm:$0xff]   ;;  %v1376_v4 = vld [vmem:[#allocation5 + $0x18] sm:$0xff]   ;;  %v1377_v5 = vld [vmem:[#allocation5 + $0x20] sm:$0xff]   ;;  %s1144_s11 = sshll.u32 %s1675_s22, 7  ;;  %s281_s13 = scalar_lea.vmem [#allocation10], %s1097_s28 }
  0x87   : > { %1212 = vmatprep.subr.bf16.mxu1 %v1621_v0  ;;  %1228 = vmatprep.mubr.msk.bf16.mxu1 %vm1622_vm0, %v1621_v0  ;;  %v1378_v6 = vld [vmem:[#allocation5 + $0x28] sm:$0xff]   ;;  %v1379_v7 = vld [vmem:[#allocation5 + $0x30] sm:$0xff]   ;;  %v1380_v8 = vld [vmem:[#allocation5 + $0x38] sm:$0xff]   ;;  %v415_v43 = vshrl.u32 %v414_v42, 7  ;;  %s989_s15 = sshll.u32 %s281_s13, 4  ;;  %s1949_s8 = scalar_lea.hbm %s1997_s5, %s1144_s11  ;;  %s1951_s15 = int_to_ptr.vmem [resolvable:$true] %s989_s15 }
  0x88   : > { %1193 = vmatpush3.bf16.msra.mxu0 %v1373_v1  ;;  %v1882_v9 = vld [vmem:[%s1855_s17] sm:$0xff]  ;;  %v1381_v11 = vld [vmem:[#allocation5 + $0x40] sm:$0xff]   ;;  %v1382_v12 = vld [vmem:[#allocation5 + $0x48] sm:$0xff]   ;;  %s976_s9 = scalar_lea.sflag [#allocation4], %s1849_s6  ;;  %s1539_s23 = scalar_lea.vmem %s1951_s15, 128 }
  0x89   : > { %1194 = vmatprep.subr.bf16.mxu0 %v1621_v0  ;;  %v284_v10 = vpack.c.bf16 %v1882_v9, %v1882_v9  ;;  %1213 = vmatpush3.bf16.msra.mxu1 %v1381_v11  ;;  %v1383_v13 = vld [vmem:[#allocation5 + $0x50] sm:$0xff]   ;;  %v1384_v14 = vld [vmem:[#allocation5 + $0x58] sm:$0xff]   ;;  %v1385_v15 = vld [vmem:[#allocation5 + $0x60] sm:$0xff]   ;;  %v1898_v45 = vsub.s32 0, %v415_v43  ;;  %p1540_p0 = scmp.ne.s32.totalorder %s1951_s15, %s1539_s23  ;;  %s1623_s22 = smov [#allocation10]  }
  0x8a   : > { %1214 = vmatprep.subr.bf16.mxu1 %v1621_v0  ;;  %v1386_v16 = vld [vmem:[#allocation5 + $0x68] sm:$0xff]   ;;  %v1387_v17 = vld [vmem:[#allocation5 + $0x70] sm:$0xff]   ;;  %v1388_v18 = vld [vmem:[#allocation5 + $0x78] sm:$0xff]   ;;  %s1543_s27 = sshll.u32 %s1623_s22, 4  ;;  %s1544_s27 = int_to_ptr.vmem [resolvable:$false] %s1543_s27 }
  0x8b   : > { %v389_v44 = vld [vmem:[#allocation7] sm:$0x1]  ;;  %v390_v48 = vld [vmem:[#allocation7 + $0x1] sm:$0x1]  ;;  %v1390_v58 = vld [vmem:[#allocation5 + $0x88] sm:$0xff]   ;;  %p1541_p3 = pnand %p1540_p0, %p1804_p5  ;;  %s1545_s12 = scalar_lea.vmem %s1544_s27, 256 }
  0x8c   : > { %1195 = vmatpush3.bf16.msra.mxu0 %v1374_v2  ;;  %v1389_v57 = vld [vmem:[#allocation5 + $0x80] sm:$0xff]   ;;  %v1391_v59 = vld [vmem:[#allocation5 + $0x90] sm:$0xff]   ;;  %v1392_v60 = vld [vmem:[#allocation5 + $0x98] sm:$0xff]   ;;  %p1546_p11 = scmp.lt.s32.totalorder %s1951_s15, %s1544_s27  ;;  %p1547_p1 = scmp.lt.s32.totalorder %s1545_s12, %s1539_s23 }
  0x8d   : > { %1196 = vmatprep.subr.bf16.mxu0 %v1621_v0  ;;  %1215 = vmatpush3.bf16.msra.mxu1 %v1382_v12  ;;  %v1393_v61 = vld [vmem:[#allocation5 + $0xa0] sm:$0xff]   ;;  %v1394_v62 = vld [vmem:[#allocation5 + $0xa8] sm:$0xff]   ;;  %v1395_v63 = vld [vmem:[#allocation5 + $0xb0] sm:$0xff]   ;;  %p1542_p7 = pneg %p1541_p3 }
  0x8e   : > { %1216 = vmatprep.subr.bf16.mxu1 %v1621_v0  ;;  %v1396_v1 = vld [vmem:[#allocation5 + $0xb8] sm:$0xff]   ;;  %v1401_v42 = vld [vmem:[#allocation5 + $0xe0] sm:$0xff]   ;;  %v1402_v43 = vld [vmem:[#allocation5 + $0xe8] sm:$0xff]   ;;  %p1548_p2 = por %p1547_p1, %p1546_p11 }
  0x90   : > { %1197 = vmatpush3.bf16.msra.mxu0 %v1375_v3  ;;  %p1549_p4 = pnand %p1548_p2, %p1542_p7 }
  0x91   : > { %1198 = vmatprep.subr.bf16.mxu0 %v1621_v0  ;;  %1217 = vmatpush3.bf16.msra.mxu1 %v1383_v13 }
  0x92   : > { %1218 = vmatprep.subr.bf16.mxu1 %v1621_v0 }
  0x94   : > { %1199 = vmatpush3.bf16.msra.mxu0 %v1376_v4 }
  0x95   : > { %1200 = vmatprep.subr.bf16.mxu0 %v1621_v0  ;;  %1219 = vmatpush3.bf16.msra.mxu1 %v1384_v14 }
  0x96   : > { %1220 = vmatprep.subr.bf16.mxu1 %v1621_v0 }
  0x98   : > { %1201 = vmatpush3.bf16.msra.mxu0 %v1377_v5 }
  0x99   : > { %1202 = vmatprep.subr.bf16.mxu0 %v1621_v0  ;;  %1221 = vmatpush3.bf16.msra.mxu1 %v1385_v15 }
  0x9a   : > { %1222 = vmatprep.subr.bf16.mxu1 %v1621_v0 }
  0x9c   : > { %1203 = vmatpush3.bf16.msra.mxu0 %v1378_v6 }
  0x9d   : > { %1204 = vmatprep.subr.bf16.mxu0 %v1621_v0  ;;  %1223 = vmatpush3.bf16.msra.mxu1 %v1386_v16 }
  0x9e   : > { %1224 = vmatprep.subr.bf16.mxu1 %v1621_v0 }
  0xa0   : > { %1205 = vmatpush3.bf16.msra.mxu0 %v1379_v7 }
  0xa1   : > { %1206 = vmatprep.subr.bf16.mxu0 %v1621_v0  ;;  %1225 = vmatpush3.bf16.msra.mxu1 %v1387_v17 }
  0xa2   : > { %1226 = vmatprep.subr.bf16.mxu1 %v1621_v0 }
  0xa4   : > { %1207 = vmatpush3.bf16.msra.mxu0 %v1380_v8 }
  0xa5   : > { %1232 = vmatprep.subr.bf16.mxu0 %v1621_v0  ;;  %1227 = vmatpush3.bf16.msra.mxu1 %v1388_v18 }
  0xa6   : > { %1252 = vmatprep.subr.bf16.mxu1 %v1621_v0 }
  0xa7   : > { %1209 = vmatmul.mubr.bf16.vlgmr.msra.gmra.mrb[0].mxu0 %v284_v10 }
  0xa8   : > { %1248 = vmatprep.mubr.msk.bf16.mxu0 %vm1622_vm0, %v1621_v0  ;;  %1233 = vmatpush3.bf16.msra.mxu0 %v1389_v57 }
  0xa9   : > { %1234 = vmatprep.subr.bf16.mxu0 %v1621_v0 }
  0xac   : > { %1235 = vmatpush3.bf16.msra.mxu0 %v1390_v58 }
  0xad   : > { %1236 = vmatprep.subr.bf16.mxu0 %v1621_v0 }
  0xb0   : > { %1237 = vmatpush3.bf16.msra.mxu0 %v1391_v59 }
  0xb1   : > { %1238 = vmatprep.subr.bf16.mxu0 %v1621_v0 }
  0xb4   : > { %1239 = vmatpush3.bf16.msra.mxu0 %v1392_v60 }
  0xb5   : > { %1240 = vmatprep.subr.bf16.mxu0 %v1621_v0 }
  0xb8   : > { %1241 = vmatpush3.bf16.msra.mxu0 %v1393_v61 }
  0xb9   : > { %1242 = vmatprep.subr.bf16.mxu0 %v1621_v0 }
  0xbc   : > { %1243 = vmatpush3.bf16.msra.mxu0 %v1394_v62 }
  0xbd   : > { %1244 = vmatprep.subr.bf16.mxu0 %v1621_v0 }
  0xc0   : > { %1245 = vmatpush3.bf16.msra.mxu0 %v1395_v63 }
  0xc1   : > { %1246 = vmatprep.subr.bf16.mxu0 %v1621_v0 }
  0xc4   : > { %1247 = vmatpush3.bf16.msra.mxu0 %v1396_v1 }
  0xc5   : > { %1272 = vmatprep.subr.bf16.mxu0 %v1621_v0 }
 0x17a   : > { %v383_v19 = vpop.f32.mrb[0].mxu0 }
 0x17b   : > { %v391_v20 = vrot.slane %v383_v19, 4  ;;  %v398_v21 = vmul.f32 %v383_v19, %v383_v19  ;;  %v1210_v22 = vpop.f32.mrb[1].mxu0 }
 0x17c   : > { %v386_v23 = vpop.f32.mrb[2].mxu0 }
 0x17d   : > { %v392_v24 = vadd.f32 %v391_v20, %v383_v19  ;;  %v399_v25 = vrot.slane %v398_v21, 4  ;;  %v1211_v26 = vpop.f32.mrb[3].mxu0 }
 0x17e   : > { %v531_v26 = vld [vmem:[#allocation7 + $0x2] sm:$0x1] }
 0x17f   : > { %v393_v27 = vrot.slane %v392_v24, 2  ;;  %v400_v28 = vadd.f32 %v399_v25, %v398_v21 }
 0x181   : > { %v394_v29 = vadd.f32 %v393_v27, %v392_v24  ;;  %v401_v30 = vrot.slane %v400_v28, 2 }
 0x183   : > { %v395_v31 = vrot.slane %v394_v29, 1  ;;  %v402_v32 = vadd.f32 %v401_v30, %v400_v28 }
 0x185   : > { %v396_v33 = vadd.f32 %v395_v31, %v394_v29  ;;  %v403_v34 = vrot.slane %v402_v32, 1  ;;  %v532_v29 = vld [vmem:[#allocation7 + $0x3] sm:$0x1] }
 0x187   : > { %v397_v35 = vmul.f32 0.125, %v396_v33  ;;  %v404_v36 = vadd.f32 %v403_v34, %v402_v32 }
 0x189   : > { %v405_v37 = vmul.f32 0.125, %v404_v36  ;;  %v406_v38 = vmul.f32 %v397_v35, %v397_v35 }
 0x18b   : > { %v407_v39 = vsub.f32 %v405_v37, %v406_v38 }
 0x18d   : > { %v408_v40 = vmax.f32 %v407_v39, 0.0  ;;  %v1397_v39 = vld [vmem:[#allocation5 + $0xc0] sm:$0xff]  }
 0x18f   : > { %v409_v41 = vadd.f32 1e-05, %v408_v40  ;;  %v1398_v40 = vld [vmem:[#allocation5 + $0xc8] sm:$0xff]  }
 0x191   : > { %1413 = vrsqrt.f32 %v409_v41  ;;  %v1399_v41 = vld [vmem:[#allocation5 + $0xd0] sm:$0xff]  }
 0x19b   : > { %v1414_v46 = vpop.eup %1413 }
 0x19c   : > { %v411_v47 = vmul.f32 %v1414_v46, %v389_v44  ;;  %v1403_v44 = vld [vmem:[#allocation5 + $0xf0] sm:$0xff]   ;;  %v1404_v46 = vld [vmem:[#allocation5 + $0xf8] sm:$0xff]  }
 0x19e   : > { %v417_v49 = vrot.slane %v411_v47, %v1898_v45  ;;  %v412_v50 = vmul.f32 %v411_v47, %v397_v35 }
 0x1a0   : > { %v413_v51 = vsub.f32 %v390_v48, %v412_v50  ;;  %v418_v52 = vmul.f32 %v417_v49, %v383_v19 }
 0x1a2   : > { %v422_v53 = vrot.slane %v413_v51, %v1898_v45 }
 0x1a4   : > { %v423_v54 = vadd.f32 %v422_v53, %v418_v52 }
 0x1a6   : > { %v424_v55 = vmax.f32 %v423_v54, 0.0 }
 0x1a8   : > { %v425_v56 = vpack.c.bf16 %v424_v55, %v424_v55 }
 0x1aa   : > { %1229 = vmatmul.mubr.bf16.vlgmr.msra.gmra.mrb[0].mxu1 %v425_v56 }
 0x1ab   : > { %1268 = vmatprep.mubr.msk.bf16.mxu1 %vm1622_vm0, %v1621_v0  ;;  %1253 = vmatpush3.bf16.msra.mxu1 %v1397_v39 }
 0x1ac   : > { %1254 = vmatprep.subr.bf16.mxu1 %v1621_v0 }
 0x1af   : > { %1255 = vmatpush3.bf16.msra.mxu1 %v1398_v40 }
 0x1b0   : > { %1256 = vmatprep.subr.bf16.mxu1 %v1621_v0 }
 0x1b3   : > { %1257 = vmatpush3.bf16.msra.mxu1 %v1399_v41 }
 0x1b4   : > { %1258 = vmatprep.subr.bf16.mxu1 %v1621_v0 }
 0x27d   : > { %v525_v2 = vpop.f32.mrb[0].mxu1 }
 0x27e   : > { %v533_v3 = vrot.slane %v525_v2, 4  ;;  %v540_v4 = vmul.f32 %v525_v2, %v525_v2  ;;  %v1230_v5 = vpop.f32.mrb[1].mxu1 }
 0x27f   : > { %v528_v6 = vpop.f32.mrb[2].mxu1 }
 0x280   : > { %v534_v7 = vadd.f32 %v533_v3, %v525_v2  ;;  %v541_v8 = vrot.slane %v540_v4, 4  ;;  %v1231_v10 = vpop.f32.mrb[3].mxu1 }
 0x282   : > { %v535_v11 = vrot.slane %v534_v7, 2  ;;  %v542_v12 = vadd.f32 %v541_v8, %v540_v4 }
 0x284   : > { %v536_v13 = vadd.f32 %v535_v11, %v534_v7  ;;  %v543_v14 = vrot.slane %v542_v12, 2  ;;  %v674_v7 = vld [vmem:[#allocation7 + $0x4] sm:$0x1]  ;;  %v675_v11 = vld [vmem:[#allocation7 + $0x5] sm:$0x1] }
 0x286   : > { %v537_v15 = vrot.slane %v536_v13, 1  ;;  %v544_v16 = vadd.f32 %v543_v14, %v542_v12 }
 0x288   : > { %v538_v17 = vadd.f32 %v537_v15, %v536_v13  ;;  %v545_v18 = vrot.slane %v544_v16, 1 }
 0x28a   : > { %v539_v19 = vmul.f32 0.125, %v538_v17  ;;  %v546_v20 = vadd.f32 %v545_v18, %v544_v16 }
 0x28c   : > { %v547_v21 = vmul.f32 0.125, %v546_v20  ;;  %v548_v22 = vmul.f32 %v539_v19, %v539_v19  ;;  %v1405_v20 = vld [vmem:[#allocation8] sm:$0xff]  }
 0x28e   : > { %v549_v23 = vsub.f32 %v547_v21, %v548_v22  ;;  %v1406_v21 = vld [vmem:[#allocation8 + $0x8] sm:$0xff]   ;;  %v1407_v22 = vld [vmem:[#allocation8 + $0x10] sm:$0xff]  }
 0x290   : > { %v550_v24 = vmax.f32 %v549_v23, 0.0  ;;  %v1408_v23 = vld [vmem:[#allocation8 + $0x18] sm:$0xff]  }
 0x292   : > { %v551_v25 = vadd.f32 1e-05, %v550_v24  ;;  %v1409_v24 = vld [vmem:[#allocation8 + $0x20] sm:$0xff]  }
 0x294   : > { %1415 = vrsqrt.f32 %v551_v25  ;;  %v1410_v25 = vld [vmem:[#allocation8 + $0x28] sm:$0xff]  }
 0x29e   : > { %v1416_v27 = vpop.eup %1415 }
 0x29f   : > { %v553_v28 = vmul.f32 %v1416_v27, %v531_v26  ;;  %v1411_v26 = vld [vmem:[#allocation8 + $0x30] sm:$0xff]   ;;  %v1412_v27 = vld [vmem:[#allocation8 + $0x38] sm:$0xff]  }
 0x2a1   : > { %v554_v30 = vmul.f32 %v553_v28, %v539_v19  ;;  %v559_v31 = vrot.slane %v553_v28, %v1898_v45 }
 0x2a3   : > { %v555_v32 = vsub.f32 %v532_v29, %v554_v30  ;;  %v560_v33 = vmul.f32 %v559_v31, %v525_v2 }
 0x2a5   : > { %v564_v34 = vrot.slane %v555_v32, %v1898_v45 }
 0x2a7   : > { %v565_v35 = vadd.f32 %v564_v34, %v560_v33 }
 0x2a9   : > { %v566_v36 = vadd.f32 %v565_v35, %v1882_v9  ;;  %v1400_v9 = vld [vmem:[#allocation5 + $0xd8] sm:$0xff]  }
 0x2aa   : > { %1259 = vmatpush3.bf16.msra.mxu1 %v1400_v9 }
 0x2ab   : > { %v1915_v37 = vmax.f32 %v566_v36, 0.0  ;;  %1260 = vmatprep.subr.bf16.mxu1 %v1621_v0 }
 0x2ad   : > { %v568_v38 = vpack.c.bf16 %v1915_v37, %v1915_v37 }
 0x2ae   : > { %1261 = vmatpush3.bf16.msra.mxu1 %v1401_v42 }
 0x2af   : > { %1249 = vmatmul.mubr.bf16.vlgmr.msra.gmra.mrb[4].mxu0 %v568_v38  ;;  %1262 = vmatprep.subr.bf16.mxu1 %v1621_v0 }
 0x2b0   : > { %1288 = vmatprep.mubr.msk.bf16.mxu0 %vm1622_vm0, %v1621_v0  ;;  %1273 = vmatpush3.bf16.msra.mxu0 %v1405_v20 }
 0x2b1   : > { %1274 = vmatprep.subr.bf16.mxu0 %v1621_v0 }
 0x2b2   : > { %1263 = vmatpush3.bf16.msra.mxu1 %v1402_v43 }
 0x2b3   : > { %1264 = vmatprep.subr.bf16.mxu1 %v1621_v0 }
 0x2b4   : > { %1275 = vmatpush3.bf16.msra.mxu0 %v1406_v21 }
 0x2b5   : > { %1276 = vmatprep.subr.bf16.mxu0 %v1621_v0 }
 0x2b6   : > { %1265 = vmatpush3.bf16.msra.mxu1 %v1403_v44 }
 0x2b7   : > { %1266 = vmatprep.subr.bf16.mxu1 %v1621_v0 }
 0x2b8   : > { %1277 = vmatpush3.bf16.msra.mxu0 %v1407_v22 }
 0x2b9   : > { %1278 = vmatprep.subr.bf16.mxu0 %v1621_v0 }
 0x2ba   : > { %1267 = vmatpush3.bf16.msra.mxu1 %v1404_v46 }
 0x2bc   : > { %1279 = vmatpush3.bf16.msra.mxu0 %v1408_v23 }
 0x2bd   : > { %1280 = vmatprep.subr.bf16.mxu0 %v1621_v0 }
 0x2c0   : > { %1281 = vmatpush3.bf16.msra.mxu0 %v1409_v24 }
 0x2c1   : > { %1282 = vmatprep.subr.bf16.mxu0 %v1621_v0 }
 0x2c4   : > { %1283 = vmatpush3.bf16.msra.mxu0 %v1410_v25 }
 0x2c5   : > { %1284 = vmatprep.subr.bf16.mxu0 %v1621_v0 }
 0x2c8   : > { %1285 = vmatpush3.bf16.msra.mxu0 %v1411_v26 }
 0x2c9   : > { %1286 = vmatprep.subr.bf16.mxu0 %v1621_v0 }
 0x2cc   : > { %1287 = vmatpush3.bf16.msra.mxu0 %v1412_v27 }
 0x382   : > { %v668_v47 = vpop.f32.mrb[4].mxu0 }
 0x383   : > { %v676_v48 = vrot.slane %v668_v47, 4  ;;  %v683_v49 = vmul.f32 %v668_v47, %v668_v47  ;;  %v1250_v50 = vpop.f32.mrb[5].mxu0 }
 0x384   : > { %v671_v51 = vpop.f32.mrb[6].mxu0 }
 0x385   : > { %v677_v52 = vadd.f32 %v676_v48, %v668_v47  ;;  %v684_v53 = vrot.slane %v683_v49, 4  ;;  %v1251_v54 = vpop.f32.mrb[7].mxu0  ;;  %v816_v51 = vld [vmem:[#allocation7 + $0x6] sm:$0x1] }
 0x386   : > { %v817_v54 = vld [vmem:[#allocation7 + $0x7] sm:$0x1] }
 0x387   : > { %v678_v55 = vrot.slane %v677_v52, 2  ;;  %v685_v56 = vadd.f32 %v684_v53, %v683_v49 }
 0x389   : > { %v679_v57 = vadd.f32 %v678_v55, %v677_v52  ;;  %v686_v58 = vrot.slane %v685_v56, 2 }
 0x38b   : > { %v680_v59 = vrot.slane %v679_v57, 1  ;;  %v687_v60 = vadd.f32 %v686_v58, %v685_v56 }
 0x38d   : > { %v681_v61 = vadd.f32 %v680_v59, %v679_v57  ;;  %v688_v62 = vrot.slane %v687_v60, 1 }
 0x38f   : > { %v682_v63 = vmul.f32 0.125, %v681_v61  ;;  %v689_v1 = vadd.f32 %v688_v62, %v687_v60 }
 0x391   : > { %v690_v2 = vmul.f32 0.125, %v689_v1  ;;  %v691_v3 = vmul.f32 %v682_v63, %v682_v63  ;;  %v1134_v1 = vld [vmem:[%s1996_s4] ss:$0 sm:$0xff] }
 0x393   : > { %v692_v4 = vsub.f32 %v690_v2, %v691_v3 }
 0x395   : > { %v693_v5 = vmax.f32 %v692_v4, 0.0 }
 0x397   : > { %v694_v6 = vadd.f32 1e-05, %v693_v5 }
 0x399   : > { %1417 = vrsqrt.f32 %v694_v6 }
 0x3a3   : > { %v1418_v8 = vpop.eup %1417 }
 0x3a4   : > { %v696_v10 = vmul.f32 %v1418_v8, %v674_v7 }
 0x3a6   : > { %v697_v12 = vmul.f32 %v696_v10, %v682_v63  ;;  %v702_v13 = vrot.slane %v696_v10, %v1898_v45 }
 0x3a8   : > { %v698_v14 = vsub.f32 %v675_v11, %v697_v12  ;;  %v703_v15 = vmul.f32 %v702_v13, %v668_v47 }
 0x3aa   : > { %v707_v16 = vrot.slane %v698_v14, %v1898_v45 }
 0x3ac   : > { %v708_v17 = vadd.f32 %v707_v16, %v703_v15 }
 0x3ae   : > { %v709_v18 = vmax.f32 %v708_v17, 0.0 }
 0x3b0   : > { %v710_v19 = vpack.c.bf16 %v709_v18, %v709_v18 }
 0x3b2   : > { %1269 = vmatmul.mubr.bf16.vlgmr.msra.gmra.mrb[4].mxu1 %v710_v19 }
 0x485   : > { %v810_v28 = vpop.f32.mrb[4].mxu1 }
 0x486   : > { %v818_v29 = vrot.slane %v810_v28, 4  ;;  %v825_v30 = vmul.f32 %v810_v28, %v810_v28  ;;  %v1270_v31 = vpop.f32.mrb[5].mxu1 }
 0x487   : > { %v813_v32 = vpop.f32.mrb[6].mxu1 }
 0x488   : > { %v819_v33 = vadd.f32 %v818_v29, %v810_v28  ;;  %v826_v34 = vrot.slane %v825_v30, 4  ;;  %v1271_v35 = vpop.f32.mrb[7].mxu1 }
 0x48a   : > { %v820_v36 = vrot.slane %v819_v33, 2  ;;  %v827_v38 = vadd.f32 %v826_v34, %v825_v30 }
 0x48c   : > { %v821_v39 = vadd.f32 %v820_v36, %v819_v33  ;;  %v828_v40 = vrot.slane %v827_v38, 2 }
 0x48e   : > { %v822_v41 = vrot.slane %v821_v39, 1  ;;  %v829_v9 = vadd.f32 %v828_v40, %v827_v38 }
 0x490   : > { %v823_v42 = vadd.f32 %v822_v41, %v821_v39  ;;  %v830_v43 = vrot.slane %v829_v9, 1 }
 0x492   : > { %v824_v44 = vmul.f32 0.125, %v823_v42  ;;  %v831_v46 = vadd.f32 %v830_v43, %v829_v9 }
 0x494   : > { %v832_v0 = vmul.f32 0.125, %v831_v46  ;;  %v833_v47 = vmul.f32 %v824_v44, %v824_v44 }
 0x496   : > { %v834_v48 = vsub.f32 %v832_v0, %v833_v47 }
 0x498   : > { %v835_v49 = vmax.f32 %v834_v48, 0.0 }
 0x49a   : > { %v836_v50 = vadd.f32 1e-05, %v835_v49 }
 0x49c   : > { %1419 = vrsqrt.f32 %v836_v50 }
 0x4a6   : > { %v1420_v52 = vpop.eup %1419 }
 0x4a7   : > { %v838_v53 = vmul.f32 %v1420_v52, %v816_v51 }
 0x4a9   : > { %v839_v55 = vmul.f32 %v838_v53, %v824_v44  ;;  %v844_v56 = vrot.slane %v838_v53, %v1898_v45 }
 0x4ab   : > { %v840_v57 = vsub.f32 %v817_v54, %v839_v55  ;;  %v845_v58 = vmul.f32 %v844_v56, %v810_v28 }
 0x4ad   : > { %v849_v59 = vrot.slane %v840_v57, %v1898_v45 }
 0x4af   : > { %v850_v60 = vadd.f32 %v849_v59, %v845_v58 }
 0x4b1   : > { %v851_v61 = vadd.f32 %v850_v60, %v1915_v37 }
 0x4b3   : > { %v852_v62 = vmax.f32 %v851_v61, 0.0 }
 0x4b5   : > { %v853_v63 = vpack.c.bf16 %v852_v62, %v852_v62 }
 0x4b7   : > { %1289 = vmatmul.mubr.bf16.vlgmr.msra.gmra.mrb[8].mxu0 %v853_v63 }
 0x58a   : > { %v959_v2 = vpop.f32.mrb[8].mxu0 }
 0x58b   : > { %v960_v3 = vadd.f32 %v1134_v1, %v959_v2  ;;  %v1290_v4 = vpop.f32.mrb[9].mxu0 }
 0x58c   : > { %v962_v5 = vpop.f32.mrb[10].mxu0 }
 0x58d   : > { %965 = vmax.xlane.f32.xlu0 %v960_v3  ;;  %v1291_v6 = vpop.f32.mrb[11].mxu0 }
 0x61a   : > { %v966_v7 = vpop.xlane.xlu0 %965 }
 0x61b   : > { %v967_v45 = vsub.f32 %v960_v3, %v966_v7 }
 0x61d   : > { %v968_v8 = vmul.f32 1.442695, %v967_v45 }
 0x61f   : > { %1421 = vpow2.f32 %v968_v8 }
 0x629   : > { %v1422_v37 = vpop.eup %1421 }
 0x62a   : > { %970 = vadd.xlane.f32.xlu0 %v1422_v37 }
 0x6b7   : > { %v971_v10 = vpop.xlane.xlu0 %970 }
 0x6b8   : > { %1423 = vrcp.f32 %v971_v10 }
 0x6c2   : > { %v1424_v11 = vpop.eup %1423 }
 0x6c3   : > { %v973_v12 = vmul.f32 %v1424_v11, %v1422_v37 }
 0x6c5   : > { %974 = vst [vmem:[%s281_s13] sm:$0xff] %v973_v12 }
 0x6c6   : > { %1552 = shalt.err (!%p1549_p4)
}
 0x6c7   : > { %s1553_s6 = scalar_lea.hbm %s1949_s8, 128  ;;  %s1557_s17 = scalar_lea.hbm %s1997_s5, 512 }
 0x6c8   : > { %p1554_p13 = scmp.ne.s32.totalorder %s1949_s8, %s1553_s6  ;;  %p1558_p8 = scmp.lt.u32.totalorder %s1949_s8, %s1997_s5 }
 0x6c9   : > { %p1559_p12 = scmp.lt.u32.totalorder %s1557_s17, %s1553_s6  ;;  %p1561_p0 = scmp.lt.u32.totalorder %s1553_s6, %s1949_s8 }
 0x6ca   : > { %p1555_p9 = pnand %p1554_p13, %p1804_p5 }
 0x6cb   : > { %p1560_p6 = por %p1559_p12, %p1558_p8 }
 0x6cc   : > { %p1556_p10 = pneg %p1555_p9 }
 0x6cd   : > { %p1562_p3 = por %p1561_p0, %p1560_p6 }
 0x6cf   : > { %p1563_p7 = pnand %p1562_p3, %p1556_p10 }
 0x6d1   : > { %1566 = shalt.err (!%p1563_p7)
}
 0x6d2   : > { %1306 = dma.vmem_to_hbm [thread:$0]  (%p1804_p5), %s1951_s15, 128, %s1949_s8, %s976_s9  }
 0x6d3 PF: > { %p1333_p11 = scmp.ge.s32.totalorder %s1613_s21, 2  ;;  %s1001_s11 = sand.u32 1, %s1601_s18  }
 0x6d4   : > { %p2015_p1 = scmp.ne.s32.totalorder %s2002_s25, 0  ;;  %s1002_s13 = scalar_lea.sflag [#allocation4], %s1001_s11 }
 0x6d6   : > { %p1323_p2 = pnand %p1333_p11, %p2015_p1 }
 0x6d8   : > { %1596 = dma.done.wait (!%p1323_p2), %s1002_s13, 128  }
 0x6d9   : > { %1598 = vsyncadd (!%p1323_p2), %s1002_s13, 4294967168  ;;  %p20_p4 = scmp.ge.s32.totalorder %s1790_s14, 6   ;;  %s2016_s18 = smov %s1605_s19 }
 0x6da   : > { %s2017_s19 = smov %s1609_s20  ;;  %s2018_s20 = smov %s1800_s30 }
 0x6db   : > { %s2019_s21 = smov %s1790_s14  ;;  %22 = sbr.rel (!%p20_p4) target bundleno = 7 (0x7), region = 100 }
 0x6e2   :  { %1007 = vsyncpa [#allocation3], 1 }
 0x6e3   :  { %1009 = vsyncpa [#allocation3 + $0x1], 1 }
 0x6e4   :  { %1010 = vsyncpa [#allocation6], 1 }
 0x6e5   :  { %1011 = vsyncpa [#allocation9], 1 }
 0x6e6   :  { %1012 = vsyncpa [#allocation4], 1 }
 0x6e7   :  { %1014 = vsyncpa [#allocation4 + $0x1], 1 }

</bundles_post_ra>
